<compile_context>
chip_gen: v5e
topology: v5e:2x2
jax: 0.10.0
libtpu: 0.0.40
codegen_flags: <defaults>
</compile_context>

<pallas_src>
import jax
import jax.numpy as jnp
from jax.experimental import pallas as pl
from jax.experimental.pallas import tpu as pltpu

_LANE = 128


def _shuffle2_kernel(x_even_ref, x_odd_ref, o0_ref, o1_ref):
    # Full-block, lane-dense copies; the BlockSpecs already carved out the
    # even / odd half of every channel-pair row.
    o0_ref[...] = x_even_ref[...]
    o1_ref[...] = x_odd_ref[...]


def _sublane_multiple(itemsize: int) -> int:
    # Rows per packed (8,128) sublane tile: f32/i32 -> 8, bf16 -> 16, int8 -> 32.
    return {4: 8, 2: 16, 1: 32}.get(itemsize, 8)


def _round_up(a: int, m: int) -> int:
    return ((a + m - 1) // m) * m


def _cdiv(a: int, b: int) -> int:
    return -(-a // b)


def _pick_tiles(R: int, HW: int, itemsize: int, target_bytes: int):
    """Pick (rb, cb): rows per block and columns (over HW) per block.

    cb always divides HW and is a multiple of 128 (HW % 128 == 0 is a
    precondition of the Pallas path), so the odd-half column block index
    (j + HW // cb) stays block-aligned.  rb is a multiple of the dtype's
    sublane packing or the full row extent.
    """
    mult = _sublane_multiple(itemsize)
    base_rows = min(R, mult)

    # --- columns: keep full rows unless a minimal row block blows the budget ---
    row_pair_bytes = 2 * HW * itemsize          # even + odd chunk of one row
    if row_pair_bytes * base_rows <= target_bytes:
        cb = HW
    else:
        q = HW // _LANE
        budget_lanes = max(1, target_bytes // (2 * base_rows * itemsize * _LANE))
        d = min(q, budget_lanes)
        while d > 1 and q % d != 0:             # largest divisor of q under budget
            d -= 1
        cb = d * _LANE

    # --- rows ---
    if R <= mult:
        return R, cb                            # full extent rows (always legal)

    step_bytes = 2 * cb * itemsize              # input bytes per row per grid step
    rb_budget = max(mult, (target_bytes // max(step_bytes, 1)) // mult * mult)
    # At least 2 blocks, and an even count, so v7x's 2 TensorCores split the
    # parallel axis into roughly equal halves.
    n = max(2, _cdiv(R, rb_budget))
    if n % 2:
        n += 1
    rb = min(rb_budget, _round_up(_cdiv(R, n), mult))
    rb = max(mult, rb)
    if rb >= R:
        rb = R
    return rb, cb


def shuffle_channels(x: jax.Array, *, groups: int = 2):
    """ShuffleChannels forward. Returns a tuple of two (B, C//2, H, W) arrays."""
    assert groups == 2
    B, C, H, W = x.shape
    assert C % 4 == 0
    HW = H * W
    R = B * (C // 2)                            # one row per (batch, channel-pair)
    itemsize = jnp.dtype(x.dtype).itemsize
    out_shape = (B, C // groups, H, W)

    if HW % _LANE != 0:
        # Lane-unaligned split: masked stores / relayouts would dominate in a
        # Pallas kernel; a plain XLA strided slice hits the same 1R+1W roofline.
        return x[:, 0::2].reshape(out_shape), x[:, 1::2].reshape(out_shape)

    # TODO(synk): optional short-circuit to the XLA slice for tiny tensors
    # (< ~1 MiB) to skip pallas_call launch overhead; kept on the kernel path
    # here so the Pallas kernel always executes.

    # Free (contiguous) reshape: row r = [channel 2c', channel 2c'+1] for
    # r = b*(C//2) + c'.  No padding or HBM round-trips.
    x2d = x.reshape(R, 2 * HW)

    target_bytes = 8 << 20                      # ~8 MiB of input per grid step
    rb, cb = _pick_tiles(R, HW, itemsize, target_bytes)
    ncb = HW // cb                              # column-block offset of the odd half
    grid = (pl.cdiv(R, rb), ncb)

    # Peak VMEM: 2 (double buffer) x (2 input + 2 output blocks).
    block_bytes = rb * cb * itemsize
    vmem_limit = min(56 << 20, max(32 << 20, 8 * block_bytes + (4 << 20)))

    out_sds = jax.ShapeDtypeStruct((R, HW), x.dtype)
    cost = pl.CostEstimate(
        flops=0,
        transcendentals=0,
        bytes_accessed=2 * x.size * itemsize,   # read once + write once
    )

    o0, o1 = pl.pallas_call(
        _shuffle2_kernel,
        out_shape=(out_sds, out_sds),
        grid_spec=pltpu.PrefetchScalarGridSpec(
            num_scalar_prefetch=0,
            grid=grid,
            in_specs=[
                # even half of each channel-pair row
                pl.BlockSpec((rb, cb), lambda i, j: (i, j)),
                # odd half: same rows, column blocks offset by HW // cb
                pl.BlockSpec((rb, cb), lambda i, j, ncb=ncb: (i, j + ncb)),
            ],
            out_specs=[
                pl.BlockSpec((rb, cb), lambda i, j: (i, j)),
                pl.BlockSpec((rb, cb), lambda i, j: (i, j)),
            ],
        ),
        compiler_params=pltpu.CompilerParams(
            dimension_semantics=("parallel", "parallel"),
            vmem_limit_bytes=vmem_limit,
        ),
        cost_estimate=cost,
    )(x2d, x2d)

    return o0.reshape(out_shape), o1.reshape(out_shape)


def _shuffle_ref(x, groups=2):
    # Pure-JAX reference matching the PyTorch module exactly.
    B, C, H, W = x.shape
    xr = x.reshape(B * C // groups, groups, H * W)
    xr = jnp.transpose(xr, (1, 0, 2))
    xr = xr.reshape(groups, -1, C // groups, H, W)
    return xr[0], xr[1]


def _check(x):
    y0, y1 = shuffle_channels(x)
    jax.block_until_ready((y0, y1))
    r0, r1 = _shuffle_ref(x)
    assert y0.shape == r0.shape and y1.shape == r1.shape
    assert y0.dtype == x.dtype and y1.dtype == x.dtype
    # Pure data movement -> exact equality.
    assert jnp.array_equal(y0, r0), "mismatch vs reference (even channels)"
    assert jnp.array_equal(y1, r1), "mismatch vs reference (odd channels)"


if __name__ == "__main__":
    key = jax.random.PRNGKey(0)

    # NCHW, as the PyTorch module expects; C % 4 == 0.  (Small test shape.)
    x = jax.random.normal(key, (2, 4, 16, 16), dtype=jnp.float32)
    _check(x)

    # A second, multi-block bf16 case exercising the balanced row grid and the
    # dtype-aware sublane alignment (grid = (2, 1), rb = 16 for bf16).
    x2 = jax.random.normal(key, (4, 16, 32, 32), dtype=jnp.bfloat16)
    _check(x2)

    print("KERNEL_OK")
</pallas_src>

<mosaic_0001>
module attributes {stable_mosaic.version = 11 : i64} {
  func.func @_shuffle2_kernel(%arg0: i32, %arg1: i32, %arg2: memref<4x256xf32, #tpu.memory_space<vmem>>, %arg3: memref<4x256xf32, #tpu.memory_space<vmem>>, %arg4: memref<4x256xf32, #tpu.memory_space<vmem>>, %arg5: memref<4x256xf32, #tpu.memory_space<vmem>>) attributes {dimension_semantics = [#tpu.dimension_semantics<parallel>, #tpu.dimension_semantics<parallel>], iteration_bounds = array<i64: 1, 1>, scalar_prefetch = 0 : i64, scratch_operands = 0 : i64, tpu.core_type = #tpu.core_type<tc>, window_params = [{transform_indices = @transform_0, window_bounds = array<i64: 4, 256>}, {transform_indices = @transform_1, window_bounds = array<i64: 4, 256>}, {transform_indices = @transform_2, window_bounds = array<i64: 4, 256>}, {transform_indices = @transform_3, window_bounds = array<i64: 4, 256>}]} {
    %c0 = arith.constant 0 : index
    %c0_0 = arith.constant 0 : index
    %0 = vector.load %arg2[%c0, %c0_0] : memref<4x256xf32, #tpu.memory_space<vmem>>, vector<4x256xf32>
    %c0_1 = arith.constant 0 : index
    %c0_2 = arith.constant 0 : index
    %1 = vector.load %arg4[%c0_1, %c0_2] : memref<4x256xf32, #tpu.memory_space<vmem>>, vector<4x256xf32>
    tpu.vector_store %arg4[%c0_1, %c0_2], %0 {strides = array<i32>} : memref<4x256xf32, #tpu.memory_space<vmem>>, vector<4x256xf32>,
    %c0_3 = arith.constant 0 : index
    %c0_4 = arith.constant 0 : index
    %2 = vector.load %arg3[%c0_3, %c0_4] : memref<4x256xf32, #tpu.memory_space<vmem>>, vector<4x256xf32>
    %c0_5 = arith.constant 0 : index
    %c0_6 = arith.constant 0 : index
    %3 = vector.load %arg5[%c0_5, %c0_6] : memref<4x256xf32, #tpu.memory_space<vmem>>, vector<4x256xf32>
    tpu.vector_store %arg5[%c0_5, %c0_6], %2 {strides = array<i32>} : memref<4x256xf32, #tpu.memory_space<vmem>>, vector<4x256xf32>,
    return
  }
  func.func @transform_0(%arg0: i32, %arg1: i32) -> (i32, i32) {
    %c0_i32 = arith.constant 0 : i32
    return %arg0, %arg1 : i32, i32
  }
  func.func @transform_1(%arg0: i32, %arg1: i32) -> (i32, i32) {
    %c1_i32 = arith.constant 1 : i32
    %0 = arith.addi %arg1, %c1_i32 : i32
    %c0_i32 = arith.constant 0 : i32
    return %arg0, %0 : i32, i32
  }
  func.func @transform_2(%arg0: i32, %arg1: i32) -> (i32, i32) {
    %c0_i32 = arith.constant 0 : i32
    return %arg0, %arg1 : i32, i32
  }
  func.func @transform_3(%arg0: i32, %arg1: i32) -> (i32, i32) {
    %c0_i32 = arith.constant 0 : i32
    return %arg0, %arg1 : i32, i32
  }
}

</mosaic_0001>

<bundles_post_ra>
// kernel: tpu_custom_call.1
= control target key start
LH: loop header
LB: loop body
LE: loop exit
PB: predicated region body
PF: predicated region fallthrough
CT: control target
= control target key end

     0   :  { %9 = vsyncpa [#allocation3], 0  ;;  %s232_s0 = inlined_call_operand.hbm [shape: f32[4,512], index: 0, kind: input, shape index: {}]   ;;  %s233_s1 = inlined_call_operand.hbm [shape: f32[4,512], index: 1, kind: input, shape index: {}]   ;;  %s234_s2 = inlined_call_operand.hbm [shape: f32[4,256], index: 2, kind: output, shape index: {0}]   ;;  %s235_s3 = inlined_call_operand.hbm [shape: f32[4,256], index: 3, kind: output, shape index: {1}]  }
   0x1   :  { %10 = vsyncpa [#allocation6], 0 }
   0x2   :  { %11 = vsyncpa [#allocation4], 0 }
   0x3   :  { %12 = vsyncpa [#allocation9], 0  ;;  %s18_s14 = sshll.u32 %s232_s0, 4  ;;  %s196_s15 = smov [#allocation2]   ;;  %s19_s14 = int_to_ptr.hbm [resolvable:$true] %s18_s14 }
   0x4   :  { %s20_s16 = sshll.u32 %s196_s15, 4  ;;  %s87_s19 = scalar_lea.hbm %s233_s1, 8  ;;  %s21_s16 = int_to_ptr.vmem [resolvable:$true] %s20_s16 }
   0x5   :  { %23 = dma.hbm_to_vmem [thread:$0]  %s19_s14, 128, %s21_s16, [#allocation3]  }
   0x6   :  { %s33_s20 = sshll.u32 %s87_s19, 4  ;;  %s197_s21 = smov [#allocation5]   ;;  %s34_s20 = int_to_ptr.hbm [resolvable:$true] %s33_s20 }
   0x7   :  { %s35_s22 = sshll.u32 %s197_s21, 4  ;;  %s36_s22 = int_to_ptr.vmem [resolvable:$true] %s35_s22 }
   0x8   :  { %38 = dma.hbm_to_vmem [thread:$0]  %s34_s20, 128, %s36_s22, [#allocation6]  }
   0x9   :  { %188 = dma.done.wait [#allocation3], 128  }
   0xa   :  { %189 = vsyncadd [#allocation3], 4294967168 }
   0xb   :  { %190 = dma.done.wait [#allocation6], 128  }
   0xc   :  { %191 = vsyncadd [#allocation6], 4294967168  ;;  %s198_s0 = smov [#allocation7]   ;;  %s60_s26 = sshll.u32 %s234_s2, 4  ;;  %v49_v0 = vld [vmem:[#allocation2] sm:$0xff]  ;;  %v51_v1 = vld [vmem:[#allocation5] sm:$0xff]  ;;  %s61_s26 = int_to_ptr.hbm [resolvable:$true] %s60_s26 }
   0xd   :  { %s58_s23 = sshll.u32 %s198_s0, 4  ;;  %s199_s27 = smov [#allocation8]   ;;  %50 = vst [vmem:[#allocation7] sm:$0xff] %v49_v0  ;;  %s59_s23 = int_to_ptr.vmem [resolvable:$true] %s58_s23 }
   0xe   :  { %s69_s28 = sshll.u32 %s199_s27, 4  ;;  %s71_s30 = sshll.u32 %s235_s3, 4  ;;  %52 = vst [vmem:[#allocation8] sm:$0xff] %v51_v1  ;;  %s70_s28 = int_to_ptr.vmem [resolvable:$true] %s69_s28  ;;  %s72_s30 = int_to_ptr.hbm [resolvable:$true] %s71_s30 }
   0xf   :  { %63 = dma.vmem_to_hbm [thread:$0]  %s59_s23, 128, %s61_s26, [#allocation4]  }
  0x10   :  { %74 = dma.vmem_to_hbm [thread:$0]  %s70_s28, 128, %s72_s30, [#allocation9]  }
  0x11   :  { %192 = dma.done.wait [#allocation4], 128  }
  0x12   :  { %193 = vsyncadd [#allocation4], 4294967168 }
  0x13   :  { %194 = dma.done.wait [#allocation9], 128  }
  0x14   :  { %195 = vsyncadd [#allocation9], 4294967168 }
  0x15   :  { %83 = vsyncpa [#allocation3], 1 }
  0x16   :  { %84 = vsyncpa [#allocation6], 1 }
  0x17   :  { %85 = vsyncpa [#allocation4], 1 }
  0x18   :  { %86 = vsyncpa [#allocation9], 1 }

</bundles_post_ra>
